<compile_context>
chip_gen: v6e
topology: v6e:2x2x1
jax: 0.10.0
libtpu: 0.0.40
codegen_flags: <defaults>
</compile_context>

<pallas_src>
import jax
import jax.numpy as jnp
from jax import lax
from jax.experimental import pallas as pl
from jax.experimental.pallas import tpu as pltpu

INPUT_SIZE = 512
HIDDEN_SIZE = 256
MID_SIZE = 128
NUM_CLASSES = 2
HEAD_PAD = 8          # 2-class head padded to one sublane group (8 rows)
TB_MAX = 2048         # max batch-tile rows (fits 32 MiB scoped VMEM on all gens)


def _ceil_to(x, m):
    return ((x + m - 1) // m) * m


def _mlp_kernel(x_ref, w1_ref, b1_ref, w2_ref, b2_ref, w3t_ref, b3_ref, o_ref):
    # x arrives f32 straight from HBM; cast to bf16 in-kernel for the MXU.
    x_bf = x_ref[...].astype(jnp.bfloat16)

    # fc1 + ReLU: bf16 MXU matmul, f32 accumulate / bias / ReLU.
    h1 = jnp.dot(x_bf, w1_ref[...], preferred_element_type=jnp.float32)
    h1 = jnp.maximum(h1 + b1_ref[...], 0.0)

    # fc2 + ReLU.
    h2 = jnp.dot(h1.astype(jnp.bfloat16), w2_ref[...],
                 preferred_element_type=jnp.float32)
    h2 = jnp.maximum(h2 + b2_ref[...], 0.0)

    # fc3, emitted transposed: w3t (8, 128) contracted with h2 (tb, 128) over
    # the 128-dim -> (8, tb). Lane axis = batch tile (dense stores); the f32
    # output slab is 16x smaller than a (tb, 128) padded head.
    out_t = lax.dot_general(
        w3t_ref[...], h2.astype(jnp.bfloat16),
        dimension_numbers=(((1,), (1,)), ((), ())),
        preferred_element_type=jnp.float32)
    o_ref[0] = out_t + b3_ref[...]


def prepare_params(w1, b1, w2, b2, w3, b3):
    """One-time packing: bf16 matmul weights, head transposed/padded to (8, 128)."""
    w3t = jnp.zeros((HEAD_PAD, MID_SIZE), jnp.bfloat16)
    w3t = w3t.at[:NUM_CLASSES, :].set(w3.astype(jnp.bfloat16).T)
    b3t = jnp.zeros((HEAD_PAD, 1), jnp.float32)
    b3t = b3t.at[:NUM_CLASSES, 0].set(jnp.asarray(b3, jnp.float32).reshape(-1))
    return (w1.astype(jnp.bfloat16),
            jnp.asarray(b1, jnp.float32).reshape(1, HIDDEN_SIZE),
            w2.astype(jnp.bfloat16),
            jnp.asarray(b2, jnp.float32).reshape(1, MID_SIZE),
            w3t, b3t)


def modified_classifier_forward(x, params, *, tb_max=TB_MAX):
    w1, b1, w2, b2, w3t, b3t = params
    batch = x.shape[0]

    # Align batch to the 8-row sublane granule (rare, <= 7 zero rows).
    batch8 = max(8, _ceil_to(batch, 8))
    if batch8 != batch:
        x = jnp.pad(x, ((0, batch8 - batch), (0, 0)))

    # Tile selection: big tiles amortize per-step overhead, but force >= 2 grid
    # steps once the batch is large enough so the "parallel" axis shards across
    # both v7x TensorCores. A ragged last tile is handled by Pallas block
    # padding (no extra jnp.pad copy of x).
    n_tiles = pl.cdiv(batch8, tb_max)
    if n_tiles == 1 and batch8 >= 256:
        n_tiles = 2
    tb = _ceil_to(pl.cdiv(batch8, n_tiles), 8)
    n_tiles = pl.cdiv(batch8, tb)
    rows = n_tiles * tb

    const2 = lambda i: (0, 0)

    flops = 2 * rows * (INPUT_SIZE * HIDDEN_SIZE
                        + HIDDEN_SIZE * MID_SIZE
                        + MID_SIZE * HEAD_PAD)
    bytes_accessed = (batch8 * INPUT_SIZE * 4                     # x (f32 stream)
                      + INPUT_SIZE * HIDDEN_SIZE * 2              # w1 (bf16)
                      + HIDDEN_SIZE * MID_SIZE * 2                # w2 (bf16)
                      + HEAD_PAD * MID_SIZE * 2                   # w3^T (bf16)
                      + (HIDDEN_SIZE + MID_SIZE + HEAD_PAD) * 4   # biases (f32)
                      + rows * HEAD_PAD * 4)                      # output slab

    out3 = pl.pallas_call(
        _mlp_kernel,
        out_shape=jax.ShapeDtypeStruct((n_tiles, HEAD_PAD, tb), jnp.float32),
        grid=(n_tiles,),
        in_specs=[
            pl.BlockSpec((tb, INPUT_SIZE), lambda i: (i, 0)),   # x: streamed per tile
            pl.BlockSpec((INPUT_SIZE, HIDDEN_SIZE), const2),    # w1: resident
            pl.BlockSpec((1, HIDDEN_SIZE), const2),             # b1
            pl.BlockSpec((HIDDEN_SIZE, MID_SIZE), const2),      # w2
            pl.BlockSpec((1, MID_SIZE), const2),                # b2
            pl.BlockSpec((HEAD_PAD, MID_SIZE), const2),         # w3^T (padded)
            pl.BlockSpec((HEAD_PAD, 1), const2),                # b3 (padded)
        ],
        out_specs=pl.BlockSpec((1, HEAD_PAD, tb), lambda i: (i, 0, 0)),
        compiler_params=pltpu.CompilerParams(
            dimension_semantics=("parallel",),
            vmem_limit_bytes=32 * 1024 * 1024),
        cost_estimate=pl.CostEstimate(
            flops=flops, transcendentals=0, bytes_accessed=bytes_accessed),
    )(x, w1, b1, w2, b2, w3t, b3t)

    # (n_tiles, 8, tb) -> (rows, 8) -> slice real batch rows and real classes.
    logits = jnp.moveaxis(out3, 1, 2).reshape(rows, HEAD_PAD)
    return logits[:batch, :NUM_CLASSES]


def init_params(key):
    """Deterministic init mimicking nn.Linear's uniform(-1/sqrt(fan_in), ...)."""
    keys = jax.random.split(key, 6)

    def linear(kw, kb, fan_in, fan_out):
        bound = 1.0 / jnp.sqrt(jnp.float32(fan_in))
        # stored as (in, out) so the forward computes x @ W directly
        w = jax.random.uniform(kw, (fan_in, fan_out), jnp.float32, -bound, bound)
        b = jax.random.uniform(kb, (1, fan_out), jnp.float32, -bound, bound)
        return w, b

    w1, b1 = linear(keys[0], keys[1], INPUT_SIZE, HIDDEN_SIZE)
    w2, b2 = linear(keys[2], keys[3], HIDDEN_SIZE, MID_SIZE)
    w3, b3 = linear(keys[4], keys[5], MID_SIZE, NUM_CLASSES)
    return w1, b1, w2, b2, w3, b3


if __name__ == "__main__":
    key = jax.random.PRNGKey(0)
    k_x, k_p = jax.random.split(key)

    batch = 8
    x = jax.random.normal(k_x, (batch, INPUT_SIZE), dtype=jnp.float32)
    raw = init_params(k_p)
    params = prepare_params(*raw)

    fwd = jax.jit(modified_classifier_forward)
    out = fwd(x, params)
    out = jax.block_until_ready(out)

    # Reference 1: same bf16-operand / f32-accumulate math (tight tolerance).
    w1, b1, w2, b2, w3, b3 = raw
    xb = x.astype(jnp.bfloat16)
    r = jnp.maximum(
        jnp.dot(xb, w1.astype(jnp.bfloat16),
                preferred_element_type=jnp.float32) + b1, 0.0)
    r = jnp.maximum(
        jnp.dot(r.astype(jnp.bfloat16), w2.astype(jnp.bfloat16),
                preferred_element_type=jnp.float32) + b2, 0.0)
    ref_bf16 = jnp.dot(r.astype(jnp.bfloat16), w3.astype(jnp.bfloat16),
                       preferred_element_type=jnp.float32) + b3

    # Reference 2: full-f32 forward (loose tolerance, checks overall fidelity).
    ref_f32 = jnp.maximum(x @ w1 + b1, 0.0)
    ref_f32 = jnp.maximum(ref_f32 @ w2 + b2, 0.0)
    ref_f32 = ref_f32 @ w3 + b3

    assert out.shape == (batch, NUM_CLASSES)
    assert jnp.allclose(out, ref_bf16, atol=2e-3, rtol=2e-3)
    assert jnp.allclose(out, ref_f32, atol=5e-2, rtol=5e-2)

    print("KERNEL_OK")
</pallas_src>

<mosaic_0001>
module attributes {stable_mosaic.version = 11 : i64} {
  func.func @_mlp_kernel(%arg0: i32, %arg1: memref<8x512xf32, #tpu.memory_space<vmem>>, %arg2: memref<512x256xbf16, #tpu.memory_space<vmem>>, %arg3: memref<1x256xf32, #tpu.memory_space<vmem>>, %arg4: memref<256x128xbf16, #tpu.memory_space<vmem>>, %arg5: memref<1x128xf32, #tpu.memory_space<vmem>>, %arg6: memref<8x128xbf16, #tpu.memory_space<vmem>>, %arg7: memref<8x1xf32, #tpu.memory_space<vmem>>, %arg8: memref<1x8x8xf32, #tpu.memory_space<vmem>>) attributes {dimension_semantics = [#tpu.dimension_semantics<parallel>], iteration_bounds = array<i64: 1>, scalar_prefetch = 0 : i64, scratch_operands = 0 : i64, tpu.core_type = #tpu.core_type<tc>, window_params = [{transform_indices = @transform_0, window_bounds = array<i64: 8, 512>}, {pipeline_mode = #tpu.pipeline_mode<synchronous>, transform_indices = @transform_1, window_bounds = array<i64: 512, 256>}, {pipeline_mode = #tpu.pipeline_mode<synchronous>, transform_indices = @transform_2, window_bounds = array<i64: 1, 256>}, {pipeline_mode = #tpu.pipeline_mode<synchronous>, transform_indices = @transform_3, window_bounds = array<i64: 256, 128>}, {pipeline_mode = #tpu.pipeline_mode<synchronous>, transform_indices = @transform_4, window_bounds = array<i64: 1, 128>}, {pipeline_mode = #tpu.pipeline_mode<synchronous>, transform_indices = @transform_5, window_bounds = array<i64: 8, 128>}, {pipeline_mode = #tpu.pipeline_mode<synchronous>, transform_indices = @transform_6, window_bounds = array<i64: 8, 1>}, {transform_indices = @transform_7, window_bounds = array<i64: 1, 8, 8>}]} {
    %c0 = arith.constant 0 : index
    %c0_0 = arith.constant 0 : index
    %0 = vector.load %arg1[%c0, %c0_0] : memref<8x512xf32, #tpu.memory_space<vmem>>, vector<8x512xf32>
    %1 = arith.truncf %0 : vector<8x512xf32> to vector<8x512xbf16>
    %c0_1 = arith.constant 0 : index
    %c0_2 = arith.constant 0 : index
    %2 = vector.load %arg2[%c0_1, %c0_2] : memref<512x256xbf16, #tpu.memory_space<vmem>>, vector<512x256xbf16>
    %cst = arith.constant dense<0.000000e+00> : vector<8x256xf32>
    %3 = tpu.matmul %1, %2, %cst {dimension_numbers = #tpu.dot_dimension_numbers<[1], [0], [0], [1], [0, 0, 1, 1], [], []>} : vector<8x512xbf16>, vector<512x256xbf16>, vector<8x256xf32> -> vector<8x256xf32>
    %c0_3 = arith.constant 0 : index
    %c0_4 = arith.constant 0 : index
    %4 = vector.load %arg3[%c0_3, %c0_4] : memref<1x256xf32, #tpu.memory_space<vmem>>, vector<1x256xf32>
    %5 = vector.broadcast %4 : vector<1x256xf32> to vector<8x256xf32>
    %6 = arith.addf %3, %5 : vector<8x256xf32>
    %cst_5 = arith.constant 0.000000e+00 : f32
    %7 = vector.broadcast %cst_5 : f32 to vector<8x256xf32>
    %8 = arith.maximumf %6, %7 : vector<8x256xf32>
    %9 = arith.truncf %8 : vector<8x256xf32> to vector<8x256xbf16>
    %c0_6 = arith.constant 0 : index
    %c0_7 = arith.constant 0 : index
    %10 = vector.load %arg4[%c0_6, %c0_7] : memref<256x128xbf16, #tpu.memory_space<vmem>>, vector<256x128xbf16>
    %cst_8 = arith.constant dense<0.000000e+00> : vector<8x128xf32>
    %11 = tpu.matmul %9, %10, %cst_8 {dimension_numbers = #tpu.dot_dimension_numbers<[1], [0], [0], [1], [0, 0, 1, 1], [], []>} : vector<8x256xbf16>, vector<256x128xbf16>, vector<8x128xf32> -> vector<8x128xf32>
    %c0_9 = arith.constant 0 : index
    %c0_10 = arith.constant 0 : index
    %12 = vector.load %arg5[%c0_9, %c0_10] : memref<1x128xf32, #tpu.memory_space<vmem>>, vector<1x128xf32>
    %13 = vector.broadcast %12 : vector<1x128xf32> to vector<8x128xf32>
    %14 = arith.addf %11, %13 : vector<8x128xf32>
    %cst_11 = arith.constant 0.000000e+00 : f32
    %15 = vector.broadcast %cst_11 : f32 to vector<8x128xf32>
    %16 = arith.maximumf %14, %15 : vector<8x128xf32>
    %c0_12 = arith.constant 0 : index
    %c0_13 = arith.constant 0 : index
    %17 = vector.load %arg6[%c0_12, %c0_13] : memref<8x128xbf16, #tpu.memory_space<vmem>>, vector<8x128xbf16>
    %18 = arith.truncf %16 : vector<8x128xf32> to vector<8x128xbf16>
    %cst_14 = arith.constant dense<0.000000e+00> : vector<8x8xf32>
    %19 = tpu.matmul %17, %18, %cst_14 {dimension_numbers = #tpu.dot_dimension_numbers<[1], [1], [0], [0], [0, 0, 1, 0], [], []>} : vector<8x128xbf16>, vector<8x128xbf16>, vector<8x8xf32> -> vector<8x8xf32>
    %c0_15 = arith.constant 0 : index
    %c0_16 = arith.constant 0 : index
    %20 = vector.load %arg7[%c0_15, %c0_16] : memref<8x1xf32, #tpu.memory_space<vmem>>, vector<8x1xf32>
    %21 = vector.broadcast %20 : vector<8x1xf32> to vector<8x8xf32>
    %22 = arith.addf %19, %21 : vector<8x8xf32>
    %c0_17 = arith.constant 0 : index
    %c0_18 = arith.constant 0 : index
    %c0_19 = arith.constant 0 : index
    %23 = vector.load %arg8[%c0_17, %c0_18, %c0_19] : memref<1x8x8xf32, #tpu.memory_space<vmem>>, vector<1x8x8xf32>
    %24 = vector.shape_cast %23 : vector<1x8x8xf32> to vector<8x8xf32>
    %25 = vector.shape_cast %22 : vector<8x8xf32> to vector<1x8x8xf32>
    tpu.vector_store %arg8[%c0_17, %c0_18, %c0_19], %25 {strides = array<i32>} : memref<1x8x8xf32, #tpu.memory_space<vmem>>, vector<1x8x8xf32>,
    return
  }
  func.func @transform_0(%arg0: i32) -> (i32, i32) {
    %c0_i32 = arith.constant 0 : i32
    %c0_i32_0 = arith.constant 0 : i32
    return %arg0, %c0_i32 : i32, i32
  }
  func.func @transform_1(%arg0: i32) -> (i32, i32) {
    %c0_i32 = arith.constant 0 : i32
    %c0_i32_0 = arith.constant 0 : i32
    %c0_i32_1 = arith.constant 0 : i32
    return %c0_i32, %c0_i32_0 : i32, i32
  }
  func.func @transform_2(%arg0: i32) -> (i32, i32) {
    %c0_i32 = arith.constant 0 : i32
    %c0_i32_0 = arith.constant 0 : i32
    %c0_i32_1 = arith.constant 0 : i32
    return %c0_i32, %c0_i32_0 : i32, i32
  }
  func.func @transform_3(%arg0: i32) -> (i32, i32) {
    %c0_i32 = arith.constant 0 : i32
    %c0_i32_0 = arith.constant 0 : i32
    %c0_i32_1 = arith.constant 0 : i32
    return %c0_i32, %c0_i32_0 : i32, i32
  }
  func.func @transform_4(%arg0: i32) -> (i32, i32) {
    %c0_i32 = arith.constant 0 : i32
    %c0_i32_0 = arith.constant 0 : i32
    %c0_i32_1 = arith.constant 0 : i32
    return %c0_i32, %c0_i32_0 : i32, i32
  }
  func.func @transform_5(%arg0: i32) -> (i32, i32) {
    %c0_i32 = arith.constant 0 : i32
    %c0_i32_0 = arith.constant 0 : i32
    %c0_i32_1 = arith.constant 0 : i32
    return %c0_i32, %c0_i32_0 : i32, i32
  }
  func.func @transform_6(%arg0: i32) -> (i32, i32) {
    %c0_i32 = arith.constant 0 : i32
    %c0_i32_0 = arith.constant 0 : i32
    %c0_i32_1 = arith.constant 0 : i32
    return %c0_i32, %c0_i32_0 : i32, i32
  }
  func.func @transform_7(%arg0: i32) -> (i32, i32, i32) {
    %c0_i32 = arith.constant 0 : i32
    %c0_i32_0 = arith.constant 0 : i32
    %c0_i32_1 = arith.constant 0 : i32
    return %arg0, %c0_i32, %c0_i32_0 : i32, i32, i32
  }
}

</mosaic_0001>

<bundles_post_ra>
// kernel: modified_classifier_forward.1
= control target key start
LH: loop header
LB: loop body
LE: loop exit
PB: predicated region body
PF: predicated region fallthrough
CT: control target
= control target key end

     0   :  { %12 = vsyncpa [#allocation3], 0  ;;  %s1160_s0 = inlined_call_operand.hbm [shape: f32[8,512], index: 0, kind: input, shape index: {}]   ;;  %s1161_s1 = inlined_call_operand.hbm [shape: bf16[512,256], index: 1, kind: input, shape index: {}]   ;;  %s1162_s2 = inlined_call_operand.vmem [shape: f32[1,256], index: 2, kind: input, shape index: {}]   ;;  %s1163_s3 = inlined_call_operand.hbm [shape: bf16[256,128], index: 3, kind: input, shape index: {}]   ;;  %s1164_s4 = inlined_call_operand.vmem [shape: f32[1,128], index: 4, kind: input, shape index: {}]   ;;  %s1165_s5 = inlined_call_operand.vmem [shape: bf16[8,128], index: 5, kind: input, shape index: {}]   ;;  %s1166_s6 = inlined_call_operand.vmem [shape: f32[8,1], index: 6, kind: input, shape index: {}]   ;;  %s1167_s7 = inlined_call_operand.vmem [shape: f32[1,8,8], index: 7, kind: output, shape index: {}]  }
   0x1   :  { %13 = vsyncpa [#allocation5], 0  ;;  %s1086_s24 = smov [#allocation4]  }
   0x2   :  { %s29_s25 = sshll.u32 %s1086_s24, 4  ;;  %s30_s25 = int_to_ptr.vmem [resolvable:$true] %s29_s25 }
   0x3   :  { %s1030_s26 = scalar_lea.vmem %s30_s25, 8192  ;;  %p1035_p1 = scmp.lt.s32.totalorder %s30_s25, %s30_s25 }
   0x4   :  { %p1031_p0 = scmp.ne.s32.totalorder %s30_s25, %s1030_s26  ;;  %p1036_p2 = scmp.lt.s32.totalorder %s1030_s26, %s1030_s26 }
   0x6   :  { %p1037_p3 = por %p1036_p2, %p1035_p1 }
   0x8   :  { %p1038_p4 = pnand %p1037_p3, %p1031_p0 }
   0xa   :  { %1041 = shalt.err (!%p1038_p4)
}
   0xb   :  { %s1087_s27 = smov 128   ;;  %s1088_s28 = smov 8  }
   0xc   :  { %35 = dma.hbm_to_vmem [thread:$0]  %s1161_s1, 8192, %s30_s25, [#allocation5], %s1087_s27, %s1087_s27, %s1088_s28  }
   0xd   :  { %s1089_s8 = smov [#allocation2]   ;;  %s1090_s10 = smov [#allocation6]  }
   0xe   :  { %s20_s9 = sshll.u32 %s1089_s8, 4  ;;  %s43_s11 = sshll.u32 %s1090_s10, 4  ;;  %s21_s9 = int_to_ptr.vmem [resolvable:$true] %s20_s9  ;;  %s44_s11 = int_to_ptr.vmem [resolvable:$true] %s43_s11 }
   0xf   :  { %s1050_s12 = scalar_lea.vmem %s21_s9, 512  ;;  %p1055_p6 = scmp.lt.s32.totalorder %s21_s9, %s21_s9 }
  0x10   :  { %p1051_p5 = scmp.ne.s32.totalorder %s21_s9, %s1050_s12  ;;  %p1056_p7 = scmp.lt.s32.totalorder %s1050_s12, %s1050_s12 }
  0x12   :  { %p1057_p8 = por %p1056_p7, %p1055_p6 }
  0x14   :  { %p1058_p9 = pnand %p1057_p8, %p1051_p5 }
  0x16   :  { %1061 = shalt.err (!%p1058_p9)
}
  0x17   :  { %23 = dma.hbm_to_vmem [thread:$0]  %s1160_s0, 512, %s21_s9, [#allocation3]  }
  0x18   :  { %s1070_s15 = scalar_lea.vmem %s44_s11, 2048  ;;  %p1075_p11 = scmp.lt.s32.totalorder %s44_s11, %s44_s11 }
  0x19   :  { %p1071_p10 = scmp.ne.s32.totalorder %s44_s11, %s1070_s15  ;;  %p1076_p12 = scmp.lt.s32.totalorder %s1070_s15, %s1070_s15 }
  0x1b   :  { %p1077_p13 = por %p1076_p12, %p1075_p11 }
  0x1d   :  { %p1078_p0 = pnand %p1077_p13, %p1071_p10 }
  0x1f   :  { %1081 = shalt.err (!%p1078_p0)
}
  0x20   :  { %s1091_s1 = smov 64   ;;  %s1092_s16 = smov 4  }
  0x21   :  { %49 = dma.hbm_to_vmem [thread:$0]  %s1163_s3, 2048, %s44_s11, [#allocation5], %s1091_s1, %s1091_s1, %s1092_s16  }
  0x22   :  { %1082 = dma.done.wait [#allocation3], 512  }
  0x23   :  { %1083 = vsyncadd [#allocation3], 4294966784 }
  0x24   :  { %1084 = dma.done.wait [#allocation5], 10240  }
  0x25   :  { %1085 = vsyncadd [#allocation5], 4294957056  ;;  %v910_v0 = vld [vmem:[#allocation4 + $0x74] ss:$8 sps:$4 sm:$0xff]   ;;  %v914_v2 = vld [vmem:[#allocation4 + $0x70] ss:$8 sps:$4 sm:$0xff]  }
  0x26   :  { %v912_v1 = vld [vmem:[#allocation4 + $0x174] ss:$8 sps:$4 sm:$0xff]   ;;  %470 = vmatprep.subr.bf16.mxu0 %v910_v0  ;;  %v915_v3 = vld [vmem:[#allocation4 + $0x170] ss:$8 sps:$4 sm:$0xff]   ;;  %v916_v4 = vld [vmem:[#allocation4 + $0x64] ss:$8 sps:$4 sm:$0xff]  }
  0x27   :  { %511 = vmatprep.subr.bf16.mxu1 %v912_v1  ;;  %471 = vmatpush1.bf16.msra.mxu0 %v914_v2  ;;  %v918_v5 = vld [vmem:[#allocation4 + $0x164] ss:$8 sps:$4 sm:$0xff]   ;;  %v920_v6 = vld [vmem:[#allocation4 + $0x60] ss:$8 sps:$4 sm:$0xff]   ;;  %v922_v8 = vld [vmem:[#allocation4 + $0x54] ss:$8 sps:$4 sm:$0xff]  }
  0x28   :  { %512 = vmatpush1.bf16.msra.mxu1 %v915_v3  ;;  %472 = vmatprep.subr.bf16.mxu0 %v916_v4  ;;  %v921_v7 = vld [vmem:[#allocation4 + $0x160] ss:$8 sps:$4 sm:$0xff]   ;;  %v924_v9 = vld [vmem:[#allocation4 + $0x154] ss:$8 sps:$4 sm:$0xff]   ;;  %v926_v10 = vld [vmem:[#allocation4 + $0x50] ss:$8 sps:$4 sm:$0xff]  }
  0x29   :  { %513 = vmatprep.subr.bf16.mxu1 %v918_v5  ;;  %v927_v11 = vld [vmem:[#allocation4 + $0x150] ss:$8 sps:$4 sm:$0xff]   ;;  %v928_v12 = vld [vmem:[#allocation4 + $0x44] ss:$8 sps:$4 sm:$0xff]   ;;  %v932_v14 = vld [vmem:[#allocation4 + $0x40] ss:$8 sps:$4 sm:$0xff]  }
  0x2a   :  { %v930_v13 = vld [vmem:[#allocation4 + $0x144] ss:$8 sps:$4 sm:$0xff]   ;;  %v933_v15 = vld [vmem:[#allocation4 + $0x140] ss:$8 sps:$4 sm:$0xff]   ;;  %v934_v16 = vld [vmem:[#allocation4 + $0x34] ss:$8 sps:$4 sm:$0xff]  }
  0x2b   :  { %473 = vmatpush1.bf16.msra.mxu0 %v920_v6  ;;  %v936_v17 = vld [vmem:[#allocation4 + $0x134] ss:$8 sps:$4 sm:$0xff]   ;;  %v938_v18 = vld [vmem:[#allocation4 + $0x30] ss:$8 sps:$4 sm:$0xff]   ;;  %v940_v20 = vld [vmem:[#allocation4 + $0x24] ss:$8 sps:$4 sm:$0xff]  }
  0x2c   :  { %514 = vmatpush1.bf16.msra.mxu1 %v921_v7  ;;  %474 = vmatprep.subr.bf16.mxu0 %v922_v8  ;;  %v939_v19 = vld [vmem:[#allocation4 + $0x130] ss:$8 sps:$4 sm:$0xff]   ;;  %v942_v21 = vld [vmem:[#allocation4 + $0x124] ss:$8 sps:$4 sm:$0xff]   ;;  %v944_v22 = vld [vmem:[#allocation4 + $0x20] ss:$8 sps:$4 sm:$0xff]  }
  0x2d   :  { %515 = vmatprep.subr.bf16.mxu1 %v924_v9  ;;  %v945_v23 = vld [vmem:[#allocation4 + $0x120] ss:$8 sps:$4 sm:$0xff]   ;;  %v946_v24 = vld [vmem:[#allocation4 + $0x14] ss:$8 sps:$4 sm:$0xff]   ;;  %v950_v26 = vld [vmem:[#allocation4 + $0x10] ss:$8 sps:$4 sm:$0xff]  }
  0x2e   :  { %v948_v25 = vld [vmem:[#allocation4 + $0x114] ss:$8 sps:$4 sm:$0xff]   ;;  %v951_v27 = vld [vmem:[#allocation4 + $0x110] ss:$8 sps:$4 sm:$0xff]   ;;  %v952_v28 = vld [vmem:[#allocation4 + $0x4] ss:$8 sps:$4 sm:$0xff]  }
  0x2f   :  { %475 = vmatpush1.bf16.msra.mxu0 %v926_v10  ;;  %v954_v29 = vld [vmem:[#allocation4 + $0x104] ss:$8 sps:$4 sm:$0xff]   ;;  %v956_v30 = vld [vmem:[#allocation4] ss:$8 sps:$4 sm:$0xff]   ;;  %v958_v32 = vld [vmem:[#allocation4 + $0xf4] ss:$8 sps:$4 sm:$0xff]  }
  0x30   :  { %516 = vmatpush1.bf16.msra.mxu1 %v927_v11  ;;  %476 = vmatprep.subr.bf16.mxu0 %v928_v12  ;;  %v957_v31 = vld [vmem:[#allocation4 + $0x100] ss:$8 sps:$4 sm:$0xff]   ;;  %v960_v33 = vld [vmem:[#allocation4 + $0x1f4] ss:$8 sps:$4 sm:$0xff]   ;;  %v962_v34 = vld [vmem:[#allocation4 + $0xf0] ss:$8 sps:$4 sm:$0xff]  }
  0x31   :  { %517 = vmatprep.subr.bf16.mxu1 %v930_v13  ;;  %v963_v35 = vld [vmem:[#allocation4 + $0x1f0] ss:$8 sps:$4 sm:$0xff]   ;;  %v964_v36 = vld [vmem:[#allocation4 + $0xe4] ss:$8 sps:$4 sm:$0xff]   ;;  %v968_v38 = vld [vmem:[#allocation4 + $0xe0] ss:$8 sps:$4 sm:$0xff]  }
  0x32   :  { %v966_v37 = vld [vmem:[#allocation4 + $0x1e4] ss:$8 sps:$4 sm:$0xff]   ;;  %v969_v39 = vld [vmem:[#allocation4 + $0x1e0] ss:$8 sps:$4 sm:$0xff]   ;;  %v970_v40 = vld [vmem:[#allocation4 + $0xd4] ss:$8 sps:$4 sm:$0xff]  }
  0x33   :  { %477 = vmatpush1.bf16.msra.mxu0 %v932_v14  ;;  %v972_v41 = vld [vmem:[#allocation4 + $0x1d4] ss:$8 sps:$4 sm:$0xff]   ;;  %v974_v42 = vld [vmem:[#allocation4 + $0xd0] ss:$8 sps:$4 sm:$0xff]   ;;  %v976_v44 = vld [vmem:[#allocation4 + $0xc4] ss:$8 sps:$4 sm:$0xff]  }
  0x34   :  { %518 = vmatpush1.bf16.msra.mxu1 %v933_v15  ;;  %478 = vmatprep.subr.bf16.mxu0 %v934_v16  ;;  %v975_v43 = vld [vmem:[#allocation4 + $0x1d0] ss:$8 sps:$4 sm:$0xff]   ;;  %v978_v45 = vld [vmem:[#allocation4 + $0x1c4] ss:$8 sps:$4 sm:$0xff]   ;;  %v980_v47 = vld [vmem:[#allocation4 + $0xc0] ss:$8 sps:$4 sm:$0xff]  }
  0x35   :  { %519 = vmatprep.subr.bf16.mxu1 %v936_v17  ;;  %v67_v46 = vld [vmem:[#allocation2 + $0x8] sm:$0xff]  ;;  %v69_v50 = vld [vmem:[#allocation2 + $0x18] sm:$0xff]  ;;  %v66_v4 = vld [vmem:[#allocation2] sm:$0xff]  ;;  %vm1094_vm0 = vmmov 0   ;;  %vm780_vm1 = vcmask 64512  }
  0x36   :  { %v981_v48 = vld [vmem:[#allocation4 + $0x1c0] ss:$8 sps:$4 sm:$0xff]   ;;  %v71_v49 = vpack.c.bf16 %v67_v46, %v67_v46  ;;  %v982_v51 = vld [vmem:[#allocation4 + $0xb4] ss:$8 sps:$4 sm:$0xff]   ;;  %v73_v52 = vpack.c.bf16 %v69_v50, %v69_v50  ;;  %v986_v54 = vld [vmem:[#allocation4 + $0xb0] ss:$8 sps:$4 sm:$0xff]   ;;  %v70_v7 = vpack.c.bf16 %v66_v4, %v66_v4 }
  0x37   :  { %479 = vmatpush1.bf16.msra.mxu0 %v938_v18  ;;  %v984_v53 = vld [vmem:[#allocation4 + $0x1b4] ss:$8 sps:$4 sm:$0xff]   ;;  %v987_v55 = vld [vmem:[#allocation4 + $0x1b0] ss:$8 sps:$4 sm:$0xff]   ;;  %v988_v56 = vld [vmem:[#allocation4 + $0xa4] ss:$8 sps:$4 sm:$0xff]  }
  0x38   :  { %520 = vmatpush1.bf16.msra.mxu1 %v939_v19  ;;  %480 = vmatprep.subr.bf16.mxu0 %v940_v20  ;;  %v990_v57 = vld [vmem:[#allocation4 + $0x1a4] ss:$8 sps:$4 sm:$0xff]   ;;  %v992_v58 = vld [vmem:[#allocation4 + $0xa0] ss:$8 sps:$4 sm:$0xff]   ;;  %v994_v60 = vld [vmem:[#allocation4 + $0x94] ss:$8 sps:$4 sm:$0xff]  }
  0x39   :  { %521 = vmatprep.subr.bf16.mxu1 %v942_v21  ;;  %502 = vmatprep.mubr.bf16.mxu0 %v71_v49  ;;  %v993_v59 = vld [vmem:[#allocation4 + $0x1a0] ss:$8 sps:$4 sm:$0xff]   ;;  %v996_v61 = vld [vmem:[#allocation4 + $0x194] ss:$8 sps:$4 sm:$0xff]   ;;  %v998_v62 = vld [vmem:[#allocation4 + $0x90] ss:$8 sps:$4 sm:$0xff]  }
  0x3a   :  { %543 = vmatprep.mubr.bf16.mxu1 %v73_v52  ;;  %v999_v63 = vld [vmem:[#allocation4 + $0x190] ss:$8 sps:$4 sm:$0xff]   ;;  %v1000_v0 = vld [vmem:[#allocation4 + $0x84] ss:$8 sps:$4 sm:$0xff]   ;;  %v1004_v2 = vld [vmem:[#allocation4 + $0x80] ss:$8 sps:$4 sm:$0xff]  }
  0x3b   :  { %481 = vmatpush1.bf16.msra.mxu0 %v944_v22  ;;  %v1002_v1 = vld [vmem:[#allocation4 + $0x184] ss:$8 sps:$4 sm:$0xff]   ;;  %v1005_v3 = vld [vmem:[#allocation4 + $0x180] ss:$8 sps:$4 sm:$0xff]   ;;  %v68_v5 = vld [vmem:[#allocation2 + $0x10] sm:$0xff]  ;;  %v1095_v49 = vmov 0  }
  0x3c   :  { %522 = vmatpush1.bf16.msra.mxu1 %v945_v23  ;;  %482 = vmatprep.subr.bf16.mxu0 %v946_v24  ;;  %v1006_v6 = vld [vmem:[#allocation6 + $0x78] sm:$0xff]   ;;  %v72_v8 = vpack.c.bf16 %v68_v5, %v68_v5  ;;  %v1008_v10 = vld [vmem:[#allocation6 + $0x70] sm:$0xff]   ;;  %v1010_v12 = vld [vmem:[#allocation6 + $0x68] sm:$0xff]   ;;  %v140_v24 = vlaneseq }
  0x3d   :  { %523 = vmatprep.subr.bf16.mxu1 %v948_v25  ;;  %v1007_v9 = vld [vmem:[#allocation6 + $0x38] sm:$0xff]   ;;  %v1009_v11 = vld [vmem:[#allocation6 + $0x30] sm:$0xff]   ;;  %v1011_v13 = vld [vmem:[#allocation6 + $0x28] sm:$0xff]   ;;  %909 = vset.pattern.permute.xlu0 %v1095_v49 }
  0x3e   :  { %v1012_v14 = vld [vmem:[#allocation6 + $0x60] sm:$0xff]   ;;  %v1014_v16 = vld [vmem:[#allocation6 + $0x58] sm:$0xff]   ;;  %v1016_v18 = vld [vmem:[#allocation6 + $0x50] sm:$0xff]   ;;  %v141_v25 = vshrl.u32 %v140_v24, 7 }
  0x3f   :  { %483 = vmatpush1.bf16.msra.mxu0 %v950_v26  ;;  %v1013_v15 = vld [vmem:[#allocation6 + $0x20] sm:$0xff]   ;;  %v1015_v17 = vld [vmem:[#allocation6 + $0x18] sm:$0xff]   ;;  %v1017_v19 = vld [vmem:[#allocation6 + $0x10] sm:$0xff]  }
  0x40   :  { %524 = vmatpush1.bf16.msra.mxu1 %v951_v27  ;;  %484 = vmatprep.subr.bf16.mxu0 %v952_v28  ;;  %v1018_v20 = vld [vmem:[#allocation6 + $0x48] sm:$0xff]   ;;  %v1020_v22 = vld [vmem:[#allocation6 + $0x40] sm:$0xff]   ;;  %v142_v26 = vsub.s32 0, %v141_v25  ;;  %v146_v28 = vsub.s32 1, %v141_v25 }
  0x41   :  { %525 = vmatprep.subr.bf16.mxu1 %v954_v29  ;;  %v1019_v21 = vld [vmem:[#allocation6 + $0x8] sm:$0xff]   ;;  %v1021_v23 = vld [vmem:[#allocation6] sm:$0xff]  }
  0x42   :  { %v138_v27 = vld [vmem:[%s1162_s2] sm:$0x3] }
  0x43   :  { %485 = vmatpush1.bf16.msra.mxu0 %v956_v30  ;;  %v143_v29 = vrot.slane %v138_v27, %v142_v26  ;;  %v147_v30 = vrot.slane %v138_v27, %v146_v28 }
  0x44   :  { %526 = vmatpush1.bf16.msra.mxu1 %v957_v31  ;;  %486 = vmatprep.subr.bf16.mxu0 %v958_v32 }
  0x45   :  { %527 = vmatprep.subr.bf16.mxu1 %v960_v33 }
  0x47   :  { %487 = vmatpush2.bf16.msra.mxu0 %v962_v34 }
  0x48   :  { %528 = vmatpush2.bf16.msra.mxu1 %v963_v35  ;;  %488 = vmatprep.subr.bf16.mxu0 %v964_v36 }
  0x49   :  { %529 = vmatprep.subr.bf16.mxu1 %v966_v37 }
  0x4b   :  { %489 = vmatpush2.bf16.msra.mxu0 %v968_v38 }
  0x4c   :  { %530 = vmatpush2.bf16.msra.mxu1 %v969_v39  ;;  %490 = vmatprep.subr.bf16.mxu0 %v970_v40 }
  0x4d   :  { %531 = vmatprep.subr.bf16.mxu1 %v972_v41 }
  0x4f   :  { %491 = vmatpush2.bf16.msra.mxu0 %v974_v42 }
  0x50   :  { %532 = vmatpush2.bf16.msra.mxu1 %v975_v43  ;;  %492 = vmatprep.subr.bf16.mxu0 %v976_v44 }
  0x51   :  { %533 = vmatprep.subr.bf16.mxu1 %v978_v45 }
  0x53   :  { %493 = vmatpush2.bf16.msra.mxu0 %v980_v47  ;;  %v1093_v47 = vmov 0.0  }
  0x54   :  { %534 = vmatpush2.bf16.msra.mxu1 %v981_v48  ;;  %494 = vmatprep.subr.bf16.mxu0 %v982_v51  ;;  %v734_v48 = vld [vmem:[%s1166_s6] sm:$0xff] }
  0x55   :  { %535 = vmatprep.subr.bf16.mxu1 %v984_v53  ;;  %737 = vperm.xlu0 %909, %v734_v48   ;;  %v852_v51 = vld [vmem:[%s1164_s4] ss:$0 sm:$0xff] }
  0x57   :  { %495 = vmatpush2.bf16.msra.mxu0 %v986_v54 }
  0x58   :  { %536 = vmatpush2.bf16.msra.mxu1 %v987_v55  ;;  %496 = vmatprep.subr.bf16.mxu0 %v988_v56 }
  0x59   :  { %537 = vmatprep.subr.bf16.mxu1 %v990_v57 }
  0x5b   :  { %497 = vmatpush2.bf16.msra.mxu0 %v992_v58 }
  0x5c   :  { %538 = vmatpush2.bf16.msra.mxu1 %v993_v59  ;;  %498 = vmatprep.subr.bf16.mxu0 %v994_v60  ;;  %v732_v59 = vld [vmem:[%s1165_s5] sm:$0xf] }
  0x5d   :  { %539 = vmatprep.subr.bf16.mxu1 %v996_v61 }
  0x5f   :  { %499 = vmatpush2.bf16.msra.mxu0 %v998_v62 }
  0x60   :  { %540 = vmatpush2.bf16.msra.mxu1 %v999_v63  ;;  %500 = vmatprep.subr.bf16.mxu0 %v1000_v0 }
  0x61   :  { %541 = vmatprep.subr.bf16.mxu1 %v1002_v1 }
  0x63   :  { %501 = vmatpush2.bf16.msra.mxu0 %v1004_v2 }
  0x64   :  { %542 = vmatpush2.bf16.msra.mxu1 %v1005_v3  ;;  %869 = vmatprep.subr.bf16.mxu0 %v1006_v6 }
  0x65   :  { %893 = vmatprep.subr.bf16.mxu1 %v1093_v47 }
  0x66   :  { %503 = vmatmul.mubr.bf16.vlgmr.msra.gmra.mxu0 %v70_v7 }
  0x67   :  { %544 = vmatmul.mubr.bf16.vlgmr.msra.gmra.mxu1 %v72_v8  ;;  %870 = vmatpush3.bf16.msra.mxu0 %v1007_v9 }
  0x68   :  { %871 = vmatprep.subr.bf16.mxu0 %v1008_v10  ;;  %895 = vmatprep.mubr.msk.bf16.mxu1 %vm1094_vm0, %v1093_v47 }
  0x6b   :  { %872 = vmatpush3.bf16.msra.mxu0 %v1009_v11 }
  0x6c   :  { %873 = vmatprep.subr.bf16.mxu0 %v1010_v12 }
  0x6f   :  { %874 = vmatpush3.bf16.msra.mxu0 %v1011_v13 }
  0x70   :  { %875 = vmatprep.subr.bf16.mxu0 %v1012_v14 }
  0x73   :  { %876 = vmatpush3.bf16.msra.mxu0 %v1013_v15 }
  0x74   :  { %877 = vmatprep.subr.bf16.mxu0 %v1014_v16 }
  0x77   :  { %878 = vmatpush3.bf16.msra.mxu0 %v1015_v17 }
  0x78   :  { %879 = vmatprep.subr.bf16.mxu0 %v1016_v18 }
  0x7b   :  { %880 = vmatpush3.bf16.msra.mxu0 %v1017_v19 }
  0x7c   :  { %881 = vmatprep.subr.bf16.mxu0 %v1018_v20 }
  0x7f   :  { %882 = vmatpush3.bf16.msra.mxu0 %v1019_v21 }
  0x80   :  { %883 = vmatprep.subr.bf16.mxu0 %v1020_v22 }
  0x83   :  { %884 = vmatpush3.bf16.msra.mxu0 %v1021_v23 }
  0xd0   :  { %v738_v60 = vpop.permute.xlu0 %737 }
 0x126   :  { %v504_v31 = vpop.f32.mrf.mxu0 }
 0x127   :  { %v545_v32 = vpop.f32.mrf.mxu1  ;;  %v505_v33 = vadd.f32 %v504_v31, %v143_v29 }
 0x128   :  { %v506_v34 = vpop.f32.mrf.mxu0 }
 0x129   :  { %v547_v35 = vpop.f32.mrf.mxu1  ;;  %v546_v36 = vadd.f32 %v545_v32, %v505_v33  ;;  %v507_v37 = vadd.f32 %v506_v34, %v147_v30 }
 0x12a   :  { %v508_v38 = vpop.f32.mrf.mxu0 }
 0x12b   :  { %v549_v39 = vpop.f32.mrf.mxu1  ;;  %v548_v40 = vadd.f32 %v547_v35, %v507_v37  ;;  %v552_v41 = vmax.f32 %v546_v36, 0.0 }
 0x12c   :  { %v509_v42 = vpop.f32.mrf.mxu0 }
 0x12d   :  { %v550_v43 = vpop.f32.mrf.mxu1  ;;  %v553_v44 = vmax.f32 %v548_v40, 0.0  ;;  %v554_v46 = vpack.c.bf16 %v552_v41, %v552_v41 }
 0x12f   :  { %v555_v45 = vpack.c.bf16 %v553_v44, %v553_v44 }
 0x131   :  { %723 = vmatprep.mubr.bf16.mxu0 %v555_v45 }
 0x132   :  { %724 = vmatmul.mubr.bf16.vlgmr.msra.gmra.mxu0 %v554_v46 }
 0x1f2   :  { %v885_v50 = vpop.f32.mrf.mxu0 }
 0x1f4   :  { %v886_v52 = vpop.f32.mrf.mxu0 }
 0x1f5   :  { %v887_v53 = vadd.f32 %v886_v52, %v885_v50 }
 0x1f6   :  { %v888_v54 = vpop.f32.mrf.mxu0 }
 0x1f7   :  { %v726_v55 = vadd.f32 %v887_v53, %v852_v51 }
 0x1f8   :  { %v889_v56 = vpop.f32.mrf.mxu0 }
 0x1f9   :  { %v731_v57 = vmax.f32 %v726_v55, 0.0 }
 0x1fb   :  { %v733_v58 = vpack.c.bf16 %v731_v57, %v731_v57 }
 0x1fd   :  { %894 = vmatpush3.bf16.xpose.msra.mxu1 %v733_v58 }
 0x204   :  { %896 = vmatmul.mubr.bf16.vlgmr.msra.gmra.mxu1 %v732_v59 }
 0x2c4   :  { %v774_v61 = vpop.f32.mrf.mxu1 }
 0x2c5   :  { %v775_v62 = vadd.f32 %v774_v61, %v738_v60 }
 0x2c6   :  { %v897_v63 = vpop.f32.mrf.mxu1 }
 0x2c7   :  { %781 = vst.msk [vmem:[%s1167_s7] sm:$0xff] %vm780_vm1, %v775_v62 }
 0x2c8   :  { %v777_v0 = vpop.f32.mrf.mxu1 }
 0x2ca   :  { %v898_v1 = vpop.f32.mrf.mxu1 }
 0x2cb   :  { %786 = vsyncpa [#allocation3], 1 }
 0x2cc   :  { %787 = vsyncpa [#allocation5], 1 }

</bundles_post_ra>
